<compile_context>
chip_gen: v7x
topology: tpu7x:2x2x1
jax: 0.10.0
libtpu: 0.0.40
codegen_flags: <defaults>
</compile_context>

<pallas_src>
import math

import jax
import jax.numpy as jnp
from jax.experimental import pallas as pl
from jax.experimental.pallas import tpu as pltpu


def _scaled_sinusoidal_kernel(scale_ref, invf_ref, phase_ref, out_ref):
    # scale_ref: SMEM (1,) f32     -- learned scale (init dim**-0.5)
    # invf_ref:  VMEM (1, dim) f32 -- inv_freq duplicated twice along the lane dim
    # phase_ref: VMEM (1, dim) f32 -- 0 for the sin half, pi/2 for the cos half
    # out_ref:   VMEM (tr, dim)    -- current sequence tile of the embedding
    i = pl.program_id(0)
    tr = out_ref.shape[0]

    # Absolute position of each row in this tile as a (tr, 1) column; cast once,
    # add the scalar tile offset once, and let the multiply broadcast along lanes.
    pos = jax.lax.broadcasted_iota(jnp.int32, (tr, 1), 0).astype(jnp.float32)
    pos = pos + (i * tr).astype(jnp.float32)

    # angle[r, c] = pos[r] * inv_freq[c % half] + (0 if c < half else pi/2)
    # so a single sin pass yields cat(sin, cos) (cos(x) == sin(x + pi/2)).
    angle = pos * invf_ref[...] + phase_ref[...]
    out_ref[...] = jnp.sin(angle) * scale_ref[0]


def _choose_tile_rows(seq_len: int, dim: int) -> int:
    # ~4 MiB f32 output block (rows multiple of 8, capped at 2048) amortizes the
    # ~0.35 us per-grid-step overhead; 2x double-buffered output stays well under the
    # scoped-VMEM defaults on v5e/v6e/v7x.
    target = (4 << 20) // (4 * dim)
    tr = max(8, min(2048, (target // 8) * 8))
    if tr >= seq_len:
        if seq_len > 8:
            # Keep >= 2 grid steps so the "parallel" axis shards across both v7x cores.
            half_rows = (seq_len + 1) // 2
            tr = min(seq_len, ((half_rows + 7) // 8) * 8)
        else:
            tr = seq_len
    return tr


@jax.jit
def scaled_sinusoidal_embedding(x: jax.Array, inv_freq: jax.Array, scale: jax.Array) -> jax.Array:
    """Pallas implementation of ScaledSinusoidalEmbedding.forward(x) (pos/seq_start_pos = None).

    Returns a (seq_len, dim) float32 embedding, seq_len = x.shape[1], dim = 2 * inv_freq.size.
    """
    # TODO(synk): optional `pos` / `seq_start_pos` arguments are not implemented (default path only).
    seq_len = int(x.shape[1])
    half = int(inv_freq.shape[0])
    dim = 2 * half

    # Duplicate inv_freq so one lane-dense (1, dim) row covers both halves, and build the
    # per-lane phase row (0 | pi/2) so a single sin produces cat(sin, cos).
    invf_full = jnp.concatenate([inv_freq, inv_freq]).astype(jnp.float32).reshape(1, dim)
    phase = jnp.concatenate(
        [jnp.zeros((half,), jnp.float32), jnp.full((half,), math.pi / 2, jnp.float32)]
    ).reshape(1, dim)
    scale = jnp.asarray(scale, jnp.float32).reshape(1)

    tr = _choose_tile_rows(seq_len, dim)
    grid = (pl.cdiv(seq_len, tr),)

    return pl.pallas_call(
        _scaled_sinusoidal_kernel,
        out_shape=jax.ShapeDtypeStruct((seq_len, dim), jnp.float32),
        grid_spec=pltpu.PrefetchScalarGridSpec(
            num_scalar_prefetch=0,
            grid=grid,
            in_specs=[
                pl.BlockSpec(memory_space=pltpu.MemorySpace.SMEM),   # scale scalar
                pl.BlockSpec((1, dim), lambda i: (0, 0)),            # inv_freq row (resident)
                pl.BlockSpec((1, dim), lambda i: (0, 0)),            # phase row (resident)
            ],
            out_specs=pl.BlockSpec((tr, dim), lambda i: (i, 0)),
        ),
        compiler_params=pltpu.CompilerParams(
            dimension_semantics=("parallel",),
        ),
    )(scale, invf_full, phase)


if __name__ == "__main__":
    key = jax.random.PRNGKey(0)

    # Small shapes consistent with the module: x is (batch, seq, features); dim is the
    # embedding width of the module (must be even).
    batch, seq, dim = 2, 8, 32
    theta = 10000.0
    x = jax.random.normal(key, (batch, seq, dim), dtype=jnp.float32)

    # Module buffers / parameters (as initialized in __init__).
    half = dim // 2
    freq_seq = jnp.arange(half, dtype=jnp.float32) / half
    inv_freq = theta ** (-freq_seq)
    scale = jnp.array([dim ** (-0.5)], dtype=jnp.float32)  # nn.Parameter init value

    emb = scaled_sinusoidal_embedding(x, inv_freq, scale)
    emb = jax.block_until_ready(emb)

    # Pure-JAX reference of the PyTorch forward.
    pos = jnp.arange(seq, dtype=jnp.float32)
    ref = pos[:, None] * inv_freq[None, :]
    ref = jnp.concatenate([jnp.sin(ref), jnp.cos(ref)], axis=-1) * scale[0]

    assert emb.shape == (seq, dim) and emb.dtype == jnp.float32
    assert bool(jnp.allclose(emb, ref, atol=1e-5, rtol=1e-5))
    print("KERNEL_OK")
</pallas_src>

<mosaic_0001>
module attributes {stable_mosaic.version = 11 : i64} {
  func.func @_scaled_sinusoidal_kernel(%arg0: i32, %arg1: memref<1xf32, #tpu.memory_space<smem>>, %arg2: memref<1x32xf32, #tpu.memory_space<vmem>>, %arg3: memref<1x32xf32, #tpu.memory_space<vmem>>, %arg4: memref<8x32xf32, #tpu.memory_space<vmem>>) attributes {dimension_semantics = [#tpu.dimension_semantics<parallel>], iteration_bounds = array<i64: 1>, scalar_prefetch = 0 : i64, scratch_operands = 0 : i64, tpu.core_type = #tpu.core_type<tc>, window_params = [{transform_indices = @transform_0, window_bounds = array<i64: 1>}, {pipeline_mode = #tpu.pipeline_mode<synchronous>, transform_indices = @transform_1, window_bounds = array<i64: 1, 32>}, {pipeline_mode = #tpu.pipeline_mode<synchronous>, transform_indices = @transform_2, window_bounds = array<i64: 1, 32>}, {transform_indices = @transform_3, window_bounds = array<i64: 8, 32>}]} {
    %0 = tpu.iota {dimensions = array<i32: 0>} : vector<8x1xi32>
    %1 = arith.sitofp %0 : vector<8x1xi32> to vector<8x1xf32>
    %c8_i32 = arith.constant 8 : i32
    %2 = arith.muli %arg0, %c8_i32 : i32
    %3 = arith.sitofp %2 : i32 to f32
    %4 = vector.broadcast %3 : f32 to vector<8x1xf32>
    %5 = arith.addf %1, %4 : vector<8x1xf32>
    %c0 = arith.constant 0 : index
    %c0_0 = arith.constant 0 : index
    %6 = vector.load %arg2[%c0, %c0_0] : memref<1x32xf32, #tpu.memory_space<vmem>>, vector<1x32xf32>
    %7 = vector.broadcast %5 : vector<8x1xf32> to vector<8x32xf32>
    %8 = vector.broadcast %6 : vector<1x32xf32> to vector<8x32xf32>
    %9 = arith.mulf %7, %8 : vector<8x32xf32>
    %c0_1 = arith.constant 0 : index
    %c0_2 = arith.constant 0 : index
    %10 = vector.load %arg3[%c0_1, %c0_2] : memref<1x32xf32, #tpu.memory_space<vmem>>, vector<1x32xf32>
    %11 = vector.broadcast %10 : vector<1x32xf32> to vector<8x32xf32>
    %12 = arith.addf %9, %11 : vector<8x32xf32>
    %13 = math.sin %12 : vector<8x32xf32>
    %c0_3 = arith.constant 0 : index
    %14 = memref.load %arg1[%c0_3] : memref<1xf32, #tpu.memory_space<smem>>
    %15 = vector.broadcast %14 : f32 to vector<8x32xf32>
    %16 = arith.mulf %13, %15 : vector<8x32xf32>
    %c0_4 = arith.constant 0 : index
    %c0_5 = arith.constant 0 : index
    %17 = vector.load %arg4[%c0_4, %c0_5] : memref<8x32xf32, #tpu.memory_space<vmem>>, vector<8x32xf32>
    tpu.vector_store %arg4[%c0_4, %c0_5], %16 {strides = array<i32>} : memref<8x32xf32, #tpu.memory_space<vmem>>, vector<8x32xf32>,
    return
  }
  func.func @transform_0(%arg0: i32) -> i32 {
    %c0_i32 = arith.constant 0 : i32
    %c0_i32_0 = arith.constant 0 : i32
    return %c0_i32 : i32
  }
  func.func @transform_1(%arg0: i32) -> (i32, i32) {
    %c0_i32 = arith.constant 0 : i32
    %c0_i32_0 = arith.constant 0 : i32
    %c0_i32_1 = arith.constant 0 : i32
    return %c0_i32, %c0_i32_0 : i32, i32
  }
  func.func @transform_2(%arg0: i32) -> (i32, i32) {
    %c0_i32 = arith.constant 0 : i32
    %c0_i32_0 = arith.constant 0 : i32
    %c0_i32_1 = arith.constant 0 : i32
    return %c0_i32, %c0_i32_0 : i32, i32
  }
  func.func @transform_3(%arg0: i32) -> (i32, i32) {
    %c0_i32 = arith.constant 0 : i32
    %c0_i32_0 = arith.constant 0 : i32
    return %arg0, %c0_i32 : i32, i32
  }
}

</mosaic_0001>

<bundles_post_ra>
// kernel: scaled_sinusoidal_embedding.1
= control target key start
LH: loop header
LB: loop body
LE: loop exit
PB: predicated region body
PF: predicated region fallthrough
CT: control target
= control target key end

     0   :  { %v16_v0 = vlaneseq  ;;  %s276_s0 = inlined_call_operand.<no memory space> [shape: f32[1], index: 0, kind: input, shape index: {}]   ;;  %s277_s1 = inlined_call_operand.vmem [shape: f32[1,32], index: 1, kind: input, shape index: {}]   ;;  %s278_s2 = inlined_call_operand.vmem [shape: f32[1,32], index: 2, kind: input, shape index: {}]   ;;  %s279_s3 = inlined_call_operand.hbm [shape: f32[8,32], index: 3, kind: output, shape index: {}]  }
   0x1   :  { %v162_v2 = vld [vmem:[%s277_s1] ss:$0 sm:$0xff] }
   0x2   :  { %v17_v1 = vshrl.u32 %v16_v0, 7 }
   0x3   :  { %9 = vsyncpa [#allocation4], 0  ;;  %v163_v4 = vld [vmem:[%s278_s2] ss:$0 sm:$0xff]  ;;  %v207_v18 = vmov 683565275  }
   0x4   :  { %v18_v3 = vcvt.s32.f32 %v17_v1  ;;  %v208_v20 = vmov 2475754826   ;;  %v209_v22 = vmov 2131351028   ;;  %v210_v24 = vmov 2102212464  }
   0x5   :  { %v211_v26 = vmov 920167782   ;;  %v212_v33 = vmov 1326507024   ;;  %s213_s16 = smov [#allocation3]   ;;  %vm146_vm13 = vcmask 261120  }
   0x6   :  { %v30_v5 = vmul.f32 %v162_v2, %v18_v3  ;;  %s154_s17 = sshll.u32 %s213_s16, 4  ;;  %s155_s17 = int_to_ptr.vmem [resolvable:$true] %s154_s17 }
   0x7   :  { %s183_s18 = scalar_lea.vmem %s155_s17, 128  ;;  %p188_p1 = scmp.lt.s32.totalorder %s155_s17, %s155_s17 }
   0x8   :  { %v240_v6 = vadd.f32 %v163_v4, %v30_v5  ;;  %p184_p0 = scmp.ne.s32.totalorder %s155_s17, %s183_s18  ;;  %p189_p2 = scmp.lt.s32.totalorder %s183_s18, %s183_s18 }
   0xa   :  { %v42_v7 = vand.u32 2139095040, %v240_v6  ;;  %v39_v9 = vand.u32 2147483647, %v240_v6  ;;  %vm41_vm7 = vcmp.lt.s32.totalorder %v240_v6, 0  ;;  %vm131_vm12 = vweird.f32 %v240_v6  ;;  %p190_p3 = por %p189_p2, %p188_p1 }
   0xc   :  { %v43_v8 = vshrl.u32 %v42_v7, 23  ;;  %v46_v12 = vand.u32 8388607, %v39_v9  ;;  %vm40_vm8 = vcmp.le.f32.partialorder %v39_v9, 0.7853982  ;;  %p191_p4 = pnand %p190_p3, %p184_p0 }
   0xe   :  { %v164_v10 = vadd.s32 4294967169, %v43_v8  ;;  %v47_v15 = vor.u32 8388608, %v46_v12 }
  0x10   :  { %v49_v11 = vadd.s32 1, %v164_v10  ;;  %v87_v35 = vshll.u32 %v47_v15, 8 }
  0x12   :  { %vm50_vm0 = vcmp.gt.s32.totalorder %v49_v11, 0 }
  0x13   :  { %v51_v13 = vsel %vm50_vm0, %v49_v11, 0 }
  0x14   :  { %v53_v14 = vand.u32 31, %v51_v13  ;;  %v52_v16 = vshrl.u32 %v51_v13, 5 }
  0x16   :  { %v54_v17 = vsub.s32 32, %v53_v14  ;;  %v56_v19 = vshll.u32 %v207_v18, %v53_v14  ;;  %v59_v21 = vshll.u32 %v208_v20, %v53_v14  ;;  %v62_v23 = vshll.u32 %v209_v22, %v53_v14 }
  0x17   :  { %v65_v25 = vshll.u32 %v210_v24, %v53_v14  ;;  %v68_v27 = vshll.u32 %v211_v26, %v53_v14  ;;  %vm71_vm1 = vcmp.lt.s32.totalorder %v52_v16, 1  ;;  %vm74_vm2 = vcmp.lt.s32.totalorder %v52_v16, 4 }
  0x18   :  { %v55_v28 = vshrl.u32 %v207_v18, %v54_v17  ;;  %v57_v29 = vshrl.u32 %v208_v20, %v54_v17  ;;  %v60_v30 = vshrl.u32 %v209_v22, %v54_v17  ;;  %v63_v31 = vshrl.u32 %v210_v24, %v54_v17 }
  0x19   :  { %v66_v32 = vshrl.u32 %v211_v26, %v54_v17  ;;  %v69_v34 = vshrl.u32 %v212_v33, %v54_v17  ;;  %vm72_vm3 = vcmp.lt.s32.totalorder %v52_v16, 2  ;;  %vm73_vm4 = vcmp.lt.s32.totalorder %v52_v16, 3 }
  0x1a   :  { %v58_v36 = vor.u32 %v57_v29, %v56_v19  ;;  %v61_v37 = vor.u32 %v60_v30, %v59_v21  ;;  %v64_v38 = vor.u32 %v63_v31, %v62_v23  ;;  %v144_v33 = vstv %s276_s0 }
  0x1b   :  { %v67_v39 = vor.u32 %v66_v32, %v65_v25  ;;  %v70_v40 = vor.u32 %v69_v34, %v68_v27 }
  0x1c   :  { %v75_v41 = vsel %vm71_vm1, %v55_v28, %v58_v36  ;;  %v76_v42 = vsel %vm74_vm2, %v64_v38, 2102212464  ;;  %v79_v43 = vsel %vm71_vm1, %v58_v36, %v61_v37  ;;  %v83_v44 = vsel %vm71_vm1, %v61_v37, %v64_v38 }
  0x1d   :  { %v77_v45 = vsel %vm73_vm4, %v61_v37, %v76_v42  ;;  %v80_v46 = vsel %vm74_vm2, %v67_v39, 920167782  ;;  %v84_v47 = vsel %vm74_vm2, %v70_v40, 1326507024 }
  0x1e   :  { %v81_v48 = vsel %vm73_vm4, %v64_v38, %v80_v46  ;;  %v85_v49 = vsel %vm73_vm4, %v67_v39, %v84_v47  ;;  %v78_v50 = vsel %vm72_vm3, %v75_v41, %v77_v45 }
  0x1f   :  { %v82_v51 = vsel %vm72_vm3, %v79_v43, %v81_v48  ;;  %v86_v52 = vsel %vm72_vm3, %v83_v44, %v85_v49  ;;  %v94_v57 = vmul.u32 %v87_v35, %v78_v50 }
  0x20   :  { %v246_v53 = vmul.u32.u64.low %v87_v35, %v86_v52  ;;  %v247_v54 = vmul.u32.u64.high %v87_v35, %v86_v52, %v246_v53  ;;  %v249_v55 = vmul.u32.u64.low %v87_v35, %v82_v51  ;;  %v250_v56 = vmul.u32.u64.high %v87_v35, %v82_v51, %v249_v55 }
  0x22   :  { %vm96_vm5 = vc.u32 %v247_v54, %v249_v55  ;;  %v97_v58 = vadd.s32 1, %v250_v56  ;;  %v95_v5 = vadd.s32 %v249_v55, %v247_v54 }
  0x24   :  { %v98_v59 = vsel %vm96_vm5, %v97_v58, %v250_v56 }
  0x25   :  { %v99_v60 = vadd.s32 %v98_v59, %v94_v57 }
  0x27   :  { %v100_v61 = vadd.s32 536870912, %v99_v60 }
  0x29   :  { %v101_v62 = vshrl.u32 %v100_v61, 30 }
  0x2b   :  { %v102_v63 = vshll.u32 %v101_v62, 30  ;;  %v125_v19 = vsub.s32 4, %v101_v62 }
  0x2d   :  { %v103_v0 = vsub.s32 %v99_v60, %v102_v63  ;;  %v126_v22 = vsel %vm41_vm7, %v125_v19, %v101_v62 }
  0x2e   :  { %v128_v25 = vsel %vm40_vm8, 0, %v126_v22 }
  0x2f   :  { %v105_v1 = vsub.s32 0, %v103_v0  ;;  %v132_v26 = vadd.s32 3, %v128_v25 }
  0x31   :  { %v165_v2 = vmin.u32 %v105_v1, %v103_v0  ;;  %v133_v27 = vand.u32 3, %v132_v26 }
  0x33   :  { %v107_v3 = vclz %v165_v2  ;;  %vm138_vm9 = vcmp.eq.s32.totalorder %v133_v27, 2  ;;  %vm135_vm10 = vcmp.eq.s32.totalorder %v133_v27, 0  ;;  %vm134_vm11 = vcmp.lt.s32.totalorder %v133_v27, 2 }
  0x35   :  { %v166_v4 = vadd.s32 4294967294, %v107_v3 }
  0x37   :  { %vm167_vm6 = vcmp.lt.s32.totalorder %v166_v4, 0 }
  0x38   :  { %v110_v7 = vsel %vm167_vm6, 0, %v166_v4 }
  0x39   :  { %v111_v8 = vsub.s32 32, %v110_v7  ;;  %v112_v10 = vshll.u32 %v103_v0, %v110_v7  ;;  %v115_v11 = vsub.s32 4294967266, %v110_v7 }
  0x3b   :  { %v113_v12 = vshrl.u32 %v95_v5, %v111_v8  ;;  %v116_v13 = vadd.s32 127, %v115_v11 }
  0x3d   :  { %v114_v14 = vor.u32 %v113_v12, %v112_v10  ;;  %v117_v15 = vshll.u32 %v116_v13, 23 }
  0x3f   :  { %v118_v16 = vor.u32 4788187, %v117_v15  ;;  %v121_v17 = vcvt.s32.f32 %v114_v14 }
  0x41   :  { %v119_v18 = vand.u32 2147483647, %v118_v16 }
  0x43   :  { %v122_v20 = vmul.f32 %v121_v17, %v119_v18 }
  0x45   :  { %v123_v21 = vxor.u32 2147483648, %v122_v20 }
  0x47   :  { %v124_v23 = vsel %vm41_vm7, %v123_v21, %v122_v20 }
  0x48   :  { %v127_v24 = vsel %vm40_vm8, %v240_v6, %v124_v23 }
  0x49   :  { %179 = vcosq.f32 %v127_v24 }
  0x4a   :  { %181 = vsinq.f32 %v127_v24 }
  0x53   :  { %v180_v28 = vpop.eup %179 }
  0x54   :  { %v182_v29 = vpop.eup %181  ;;  %v139_v30 = vxor.u32 2147483648, %v180_v28 }
  0x55   :  { %v136_v31 = vxor.u32 2147483648, %v182_v29 }
  0x56   :  { %v140_v9 = vsel %vm138_vm9, %v139_v30, %v182_v29 }
  0x57   :  { %v137_v32 = vsel %vm135_vm10, %v180_v28, %v136_v31 }
  0x58   :  { %v141_v34 = vsel %vm134_vm11, %v137_v32, %v140_v9 }
  0x59   :  { %v142_v35 = vsel %vm131_vm12, nan, %v141_v34 }
  0x5a   :  { %v145_v36 = vmul.f32 %v144_v33, %v142_v35 }
  0x5c   :  { %147 = vst.msk [vmem:[#allocation3] sm:$0xff] %vm146_vm13, %v145_v36 }
  0x5d   :  { %194 = shalt.err (!%p191_p4)
}
  0x5e   :  { %s195_s21 = scalar_lea.hbm %s279_s3, 128 }
  0x5f   :  { %p196_p5 = scmp.ne.s32.totalorder %s279_s3, %s195_s21  ;;  %p199_p6 = scmp.lt.u32.totalorder %s195_s21, %s279_s3 }
  0x61   :  { %p201_p7 = pnand %p199_p6, %p196_p5 }
  0x63   :  { %204 = shalt.err (!%p201_p7)
}
  0x64   :  { %157 = dma.vmem_to_hbm [thread:$0]  %s155_s17, 128, %s279_s3, [#allocation4]  }
  0x65   :  { %205 = dma.done.wait [#allocation4], 128  }
  0x66   :  { %206 = vsyncadd [#allocation4], 4294967168 }
  0x67   :  { %161 = vsyncpa [#allocation4], 1 }

</bundles_post_ra>
